<compile_context>
chip_gen: v5e
topology: v5e:2x2
jax: 0.10.0
libtpu: 0.0.40
codegen_flags: <defaults>
</compile_context>

<pallas_src>
import numpy as np
import jax
import jax.numpy as jnp
from jax.experimental import pallas as pl
from jax.experimental.pallas import tpu as pltpu


def _adaptive_pool_matrix(in_size, out_size, width, col_offset=0, normalize=True):
    """(out_size, width) matrix reproducing adaptive_avg_pool1d on a window.

    Row q covers input indices [floor(q*in/out), ceil((q+1)*in/out)) of the
    cutout, shifted by `col_offset` inside the full image axis.  Columns
    outside the cutout stay zero.  With normalize=False the entries are {0,1}
    (exact in bf16) and the averaging factor is applied separately.
    """
    m = np.zeros((out_size, width), dtype=np.float32)
    for q in range(out_size):
        start = (q * in_size) // out_size
        end = -((-(q + 1) * in_size) // out_size)  # ceil division
        m[q, col_offset + start:col_offset + end] = (
            (1.0 / (end - start)) if normalize else 1.0)
    return m


def _pool_counts(in_size, out_size):
    """Number of pooled input elements per output index (adaptive pooling)."""
    c = np.empty((out_size,), dtype=np.float32)
    for q in range(out_size):
        start = (q * in_size) // out_size
        end = -((-(q + 1) * in_size) // out_size)
        c[q] = end - start
    return c


def _plan_cutouts(key, sideY, sideX, cut_size, cutn, cut_pow):
    """Draw all cutout (size, offsety, offsetx) with a single batched RNG call."""
    max_size = min(sideX, sideY)
    min_size = min(sideX, sideY, cut_size)
    u = np.asarray(jax.random.uniform(key, (3, cutn), dtype=jnp.float32))
    plans = []
    for k in range(cutn):
        size = int(float(u[0, k]) ** cut_pow * (max_size - min_size) + min_size)
        offsetx = int(float(u[1, k]) * (sideX - size + 1))
        offsety = int(float(u[2, k]) * (sideY - size + 1))
        plans.append((size, offsety, offsetx))
    return plans


def _pick_nc_tile(NC, H, W, budget_bytes=12 << 20):
    """Largest divisor of NC whose double-buffered bf16 image block fits budget."""
    per_image = 2 * H * W * 2  # 2 pipeline buffers x bf16
    best = 1
    for t in range(1, NC + 1):
        if NC % t == 0 and t * per_image <= budget_bytes:
            best = t
    # TODO(synk): also tile H/W when even a single image exceeds the budget.
    return best


def _cutout_pool_kernel(x_ref, at_ref, bt_ref, s_ref, o_ref):
    # x_ref:  (tnc, H, W)  bf16 image tile; block index constant along the
    #         cutout axis -> resident in VMEM, fetched from HBM once per tile.
    # at_ref: (1, H, cs)   bf16 {0,1} height-pool indicator (transposed)
    # bt_ref: (1, W, cs)   bf16 {0,1} width-pool indicator (transposed)
    # s_ref:  (1, cs, cs)  f32 averaging scale s[p, q] = 1/(cols_p * rows_q)
    # o_ref:  (1, tnc, cs, cs) output in (p, q) orientation; wrapper transposes.
    tnc, H, W = x_ref.shape
    cs = at_ref.shape[2]

    xb = x_ref[...]                                          # (tnc, H, W) bf16

    # Width pool: one big MXU matmul with the NC tile folded into M.
    y = jnp.dot(xb.reshape(tnc * H, W), bt_ref[0],
                preferred_element_type=jnp.float32)          # (tnc*H, cs)

    # Per-image (H, cs) -> (cs, H) transpose, then height pool.
    # TODO(synk): pltpu.einshape / lane-padded cs once this shows up as
    #             XLU-bound (irrelevant while the kernel is tiny/MXU-bound).
    yt = jnp.swapaxes(y.reshape(tnc, H, cs), 1, 2).astype(jnp.bfloat16)
    z = jnp.dot(yt.reshape(tnc * cs, H), at_ref[0],
                preferred_element_type=jnp.float32)          # (tnc*cs, cs)

    # z[b, p, q] == out[b, q, p]; apply the exact f32 averaging factor and
    # store lane-dense without an in-kernel final transpose.
    out = z.reshape(tnc, cs, cs) * s_ref[0]
    o_ref[0] = out.astype(o_ref.dtype)


def make_cutouts(x, cut_size, cutn, cut_pow=1.0, key=None):
    """JAX/Pallas equivalent of MakeCutouts.forward.

    x: (N, C, H, W). Returns (cutn * N, C, cut_size, cut_size) in x.dtype.
    """
    N, C, sideY, sideX = x.shape
    cs = cut_size
    NC = N * C
    if key is None:
        key = jax.random.PRNGKey(0)

    plans = _plan_cutouts(key, sideY, sideX, cut_size, cutn, cut_pow)

    at_list, bt_list, s_list = [], [], []
    for (size, oy, ox) in plans:
        a = _adaptive_pool_matrix(size, cs, sideY, oy, normalize=False)  # (cs, H)
        b = _adaptive_pool_matrix(size, cs, sideX, ox, normalize=False)  # (cs, W)
        counts = _pool_counts(size, cs)                                  # (cs,)
        at_list.append(a.T)                                              # (H, cs)
        bt_list.append(b.T)                                              # (W, cs)
        # s[p, q] = (1 / width-count_p) * (1 / height-count_q)
        s_list.append(np.outer(1.0 / counts, 1.0 / counts).astype(np.float32))

    a_t = jnp.asarray(np.stack(at_list), dtype=jnp.bfloat16)   # (cutn, H, cs)
    b_t = jnp.asarray(np.stack(bt_list), dtype=jnp.bfloat16)   # (cutn, W, cs)
    s_pq = jnp.asarray(np.stack(s_list))                        # (cutn, cs, cs) f32

    # bf16 image in HBM: halves the only large HBM read; pooling indicators
    # are exact in bf16 so no extra quantization beyond x itself.
    x_flat = x.astype(jnp.bfloat16).reshape(NC, sideY, sideX)

    tnc = _pick_nc_tile(NC, sideY, sideX)
    num_nc_tiles = NC // tnc

    out_itemsize = jnp.dtype(x.dtype).itemsize
    # VMEM budget: double-buffered blocks + f32 matmul intermediates.
    blk_bytes = (tnc * sideY * sideX * 2
                 + (sideY + sideX) * cs * 2
                 + cs * cs * 4
                 + tnc * cs * cs * out_itemsize)
    interm_bytes = tnc * cs * (2 * sideY + cs) * 4
    vmem_need = 2 * blk_bytes + interm_bytes
    vmem_limit = int(min(max(2 * vmem_need, 32 << 20), 48 << 20))  # v7x headroom

    flops = (2 * cutn * NC * cs * sideY * sideX
             + 2 * cutn * NC * cs * cs * sideY)
    bytes_accessed = (NC * sideY * sideX * 2                 # image read once
                      + cutn * (sideY + sideX) * cs * 2      # indicators (bf16)
                      + cutn * cs * cs * 4                   # scales (f32)
                      + cutn * NC * cs * cs * out_itemsize)  # output

    out = pl.pallas_call(
        _cutout_pool_kernel,
        out_shape=jax.ShapeDtypeStruct((cutn, NC, cs, cs), x.dtype),
        grid=(num_nc_tiles, cutn),
        in_specs=[
            # Image tile: index depends only on the NC-tile axis, so it stays
            # resident in VMEM across all cutouts of that tile.
            pl.BlockSpec((tnc, sideY, sideX), lambda c, k: (c, 0, 0)),
            pl.BlockSpec((1, sideY, cs), lambda c, k: (k, 0, 0)),      # a_t
            pl.BlockSpec((1, sideX, cs), lambda c, k: (k, 0, 0)),      # b_t
            pl.BlockSpec((1, cs, cs), lambda c, k: (k, 0, 0)),         # scale
        ],
        out_specs=pl.BlockSpec((1, tnc, cs, cs), lambda c, k: (k, c, 0, 0)),
        compiler_params=pltpu.CompilerParams(
            dimension_semantics=("parallel", "parallel"),
            vmem_limit_bytes=vmem_limit,
        ),
        cost_estimate=pl.CostEstimate(flops=flops, transcendentals=0,
                                      bytes_accessed=bytes_accessed),
    )(x_flat, a_t, b_t, s_pq)

    # Kernel stores (p, q); the module's orientation is (q, p).
    out = jnp.swapaxes(out, -1, -2)
    # torch.cat(cutouts): (cutn, N*C, cs, cs) -> (cutn*N, C, cs, cs)
    return out.reshape(cutn * N, C, cs, cs)


def _reference_make_cutouts(x, cut_size, plans):
    """Pure-JAX f32 reference (exact adaptive_avg_pool2d on the same crops)."""
    outs = []
    for (size, oy, ox) in plans:
        crop = x[:, :, oy:oy + size, ox:ox + size].astype(jnp.float32)
        A = jnp.asarray(_adaptive_pool_matrix(size, cut_size, size))
        outs.append(jnp.einsum('qi,ncij,pj->ncqp', A, crop, A))
    return jnp.concatenate(outs, axis=0)


if __name__ == "__main__":
    key = jax.random.PRNGKey(0)
    k_in, k_cut = jax.random.split(key)

    N, C, H, W = 2, 4, 16, 16
    cut_size, cutn, cut_pow = 8, 4, 1.0
    x = jax.random.normal(k_in, (N, C, H, W), dtype=jnp.float32)

    out = jax.block_until_ready(make_cutouts(x, cut_size, cutn, cut_pow,
                                             key=k_cut))
    assert out.shape == (cutn * N, C, cut_size, cut_size), out.shape
    assert out.dtype == x.dtype

    # Image / intermediate are bf16 on the MXU path; weights are exact.
    plans = _plan_cutouts(k_cut, H, W, cut_size, cutn, cut_pow)
    ref = _reference_make_cutouts(x, cut_size, plans)
    err = float(jnp.max(jnp.abs(out.astype(jnp.float32) - ref)))
    assert err < 5e-2, f"max abs err {err}"

    print("KERNEL_OK")
</pallas_src>

<mosaic_0001>
module attributes {stable_mosaic.version = 11 : i64} {
  func.func @_cutout_pool_kernel(%arg0: i32, %arg1: i32, %arg2: memref<8x16x16xbf16, #tpu.memory_space<vmem>>, %arg3: memref<1x16x8xbf16, #tpu.memory_space<vmem>>, %arg4: memref<1x16x8xbf16, #tpu.memory_space<vmem>>, %arg5: memref<1x8x8xf32, #tpu.memory_space<vmem>>, %arg6: memref<1x8x8x8xf32, #tpu.memory_space<vmem>>) attributes {dimension_semantics = [#tpu.dimension_semantics<parallel>, #tpu.dimension_semantics<parallel>], iteration_bounds = array<i64: 1, 4>, scalar_prefetch = 0 : i64, scratch_operands = 0 : i64, tpu.core_type = #tpu.core_type<tc>, window_params = [{transform_indices = @transform_0, window_bounds = array<i64: 8, 16, 16>}, {transform_indices = @transform_1, window_bounds = array<i64: 1, 16, 8>}, {transform_indices = @transform_2, window_bounds = array<i64: 1, 16, 8>}, {transform_indices = @transform_3, window_bounds = array<i64: 1, 8, 8>}, {transform_indices = @transform_4, window_bounds = array<i64: 1, 8, 8, 8>}]} {
    %c0 = arith.constant 0 : index
    %c0_0 = arith.constant 0 : index
    %c0_1 = arith.constant 0 : index
    %0 = vector.load %arg2[%c0, %c0_0, %c0_1] : memref<8x16x16xbf16, #tpu.memory_space<vmem>>, vector<8x16x16xbf16>
    %1 = vector.shape_cast %0 : vector<8x16x16xbf16> to vector<128x16xbf16>
    %c0_2 = arith.constant 0 : index
    %c0_3 = arith.constant 0 : index
    %c0_4 = arith.constant 0 : index
    %2 = vector.load %arg4[%c0_2, %c0_3, %c0_4] : memref<1x16x8xbf16, #tpu.memory_space<vmem>>, vector<1x16x8xbf16>
    %3 = vector.shape_cast %2 : vector<1x16x8xbf16> to vector<16x8xbf16>
    %cst = arith.constant dense<0.000000e+00> : vector<128x8xf32>
    %4 = tpu.matmul %1, %3, %cst {dimension_numbers = #tpu.dot_dimension_numbers<[1], [0], [0], [1], [0, 0, 1, 1], [], []>} : vector<128x16xbf16>, vector<16x8xbf16>, vector<128x8xf32> -> vector<128x8xf32>
    %5 = vector.shape_cast %4 : vector<128x8xf32> to vector<8x16x8xf32>
    %6 = tpu.transpose %5, [0, 2, 1] : vector<8x16x8xf32> -> vector<8x8x16xf32>
    %7 = arith.truncf %6 : vector<8x8x16xf32> to vector<8x8x16xbf16>
    %8 = vector.shape_cast %7 : vector<8x8x16xbf16> to vector<64x16xbf16>
    %c0_5 = arith.constant 0 : index
    %c0_6 = arith.constant 0 : index
    %c0_7 = arith.constant 0 : index
    %9 = vector.load %arg3[%c0_5, %c0_6, %c0_7] : memref<1x16x8xbf16, #tpu.memory_space<vmem>>, vector<1x16x8xbf16>
    %10 = vector.shape_cast %9 : vector<1x16x8xbf16> to vector<16x8xbf16>
    %cst_8 = arith.constant dense<0.000000e+00> : vector<64x8xf32>
    %11 = tpu.matmul %8, %10, %cst_8 {dimension_numbers = #tpu.dot_dimension_numbers<[1], [0], [0], [1], [0, 0, 1, 1], [], []>} : vector<64x16xbf16>, vector<16x8xbf16>, vector<64x8xf32> -> vector<64x8xf32>
    %12 = vector.shape_cast %11 : vector<64x8xf32> to vector<8x8x8xf32>
    %c0_9 = arith.constant 0 : index
    %c0_10 = arith.constant 0 : index
    %c0_11 = arith.constant 0 : index
    %13 = vector.load %arg5[%c0_9, %c0_10, %c0_11] : memref<1x8x8xf32, #tpu.memory_space<vmem>>, vector<1x8x8xf32>
    %14 = vector.shape_cast %13 : vector<1x8x8xf32> to vector<8x8xf32>
    %15 = vector.shape_cast %14 : vector<8x8xf32> to vector<1x8x8xf32>
    %16 = vector.broadcast %15 : vector<1x8x8xf32> to vector<8x8x8xf32>
    %17 = arith.mulf %12, %16 : vector<8x8x8xf32>
    %c0_12 = arith.constant 0 : index
    %c0_13 = arith.constant 0 : index
    %c0_14 = arith.constant 0 : index
    %c0_15 = arith.constant 0 : index
    %18 = vector.load %arg6[%c0_12, %c0_13, %c0_14, %c0_15] : memref<1x8x8x8xf32, #tpu.memory_space<vmem>>, vector<1x8x8x8xf32>
    %19 = vector.shape_cast %18 : vector<1x8x8x8xf32> to vector<8x8x8xf32>
    %20 = vector.shape_cast %17 : vector<8x8x8xf32> to vector<1x8x8x8xf32>
    tpu.vector_store %arg6[%c0_12, %c0_13, %c0_14, %c0_15], %20 {strides = array<i32>} : memref<1x8x8x8xf32, #tpu.memory_space<vmem>>, vector<1x8x8x8xf32>,
    return
  }
  func.func @transform_0(%arg0: i32, %arg1: i32) -> (i32, i32, i32) {
    %c0_i32 = arith.constant 0 : i32
    %c0_i32_0 = arith.constant 0 : i32
    %c0_i32_1 = arith.constant 0 : i32
    return %arg0, %c0_i32, %c0_i32_0 : i32, i32, i32
  }
  func.func @transform_1(%arg0: i32, %arg1: i32) -> (i32, i32, i32) {
    %c0_i32 = arith.constant 0 : i32
    %c0_i32_0 = arith.constant 0 : i32
    %c0_i32_1 = arith.constant 0 : i32
    return %arg1, %c0_i32, %c0_i32_0 : i32, i32, i32
  }
  func.func @transform_2(%arg0: i32, %arg1: i32) -> (i32, i32, i32) {
    %c0_i32 = arith.constant 0 : i32
    %c0_i32_0 = arith.constant 0 : i32
    %c0_i32_1 = arith.constant 0 : i32
    return %arg1, %c0_i32, %c0_i32_0 : i32, i32, i32
  }
  func.func @transform_3(%arg0: i32, %arg1: i32) -> (i32, i32, i32) {
    %c0_i32 = arith.constant 0 : i32
    %c0_i32_0 = arith.constant 0 : i32
    %c0_i32_1 = arith.constant 0 : i32
    return %arg1, %c0_i32, %c0_i32_0 : i32, i32, i32
  }
  func.func @transform_4(%arg0: i32, %arg1: i32) -> (i32, i32, i32, i32) {
    %c0_i32 = arith.constant 0 : i32
    %c0_i32_0 = arith.constant 0 : i32
    %c0_i32_1 = arith.constant 0 : i32
    return %arg1, %arg0, %c0_i32, %c0_i32_0 : i32, i32, i32, i32
  }
}

</mosaic_0001>

<bundles_post_ra>
// kernel: tpu_custom_call.1
= control target key start
LH: loop header
LB: loop body
LE: loop exit
PB: predicated region body
PF: predicated region fallthrough
CT: control target
= control target key end

     0   :  { %9 = vsyncpa [#allocation3], 0  ;;  %s1335_s0 = inlined_call_operand.vmem [shape: bf16[8,16,16], index: 0, kind: input, shape index: {}]   ;;  %s1336_s1 = inlined_call_operand.vmem [shape: bf16[4,16,8], index: 1, kind: input, shape index: {}]   ;;  %s1337_s2 = inlined_call_operand.vmem [shape: bf16[4,16,8], index: 2, kind: input, shape index: {}]   ;;  %s1338_s3 = inlined_call_operand.vmem [shape: f32[4,8,8], index: 3, kind: input, shape index: {}]   ;;  %s1339_s4 = inlined_call_operand.hbm [shape: f32[4,8,8,8], index: 4, kind: output, shape index: {}]  }
   0x1   :  { %11 = vsyncpa [#allocation3 + $0x1], 0  ;;  %s1179_s15 = smov 0   ;;  %s1181_s16 = smov 0  }
   0x2   :  { %s1183_s17 = smov 0   ;;  %s1185_s18 = smov 0  }
   0x3   :  { %s1187_s19 = smov 0   ;;  %s1189_s20 = smov 0  }
   0x4 LB: > { %s893_s21 = sadd.s32 4294967295, %s1150_s20   ;;  %s894_s22 = sadd.s32 4294967294, %s1150_s20   ;;  %s1150_s20 = sphi %s1189_s20, %s17_s20   ;;  %s1146_s19 = sphi %s1187_s19, %s1346_s19   ;;  %s1142_s18 = sphi %s1185_s18, %s1345_s18   ;;  %s1138_s17 = sphi %s1183_s17, %s1344_s17   ;;  %s1134_s16 = sphi %s1181_s16, %s1343_s16   ;;  %s1130_s15 = sphi %s1179_s15, %s1342_s15  }
   0x5   : > { %s26_s23 = sadd.s32 1, %s1146_s19  ;;  %s142_s24 = sadd.s32 1, %s1138_s17 }
   0x6   : > { %p27_p0 = scmp.ge.s32.totalorder %s26_s23, 4  ;;  %p152_p1 = scmp.ne.s32.totalorder %s1138_s17, %s1134_s16 }
   0x7   : > { %p153_p2 = scmp.eq.s32.totalorder %s893_s21, 3  ;;  %p158_p3 = scmp.ne.s32.totalorder %s1134_s16, %s1130_s15 }
   0x8   : > { %s1348_s23 = smov (%p27_p0, %s26_s23), 0  ;;  %p159_p5 = scmp.eq.s32.totalorder %s894_s22, 3 }
   0x9   : > { %p1219_p4 = por %p153_p2, %p152_p1  ;;  %s137_s26 = ssub.s32 %s1146_s19, %s1348_s23 }
   0xa   : > { %p898_p6 = scmp.ge.s32.totalorder %s1150_s20, 1  ;;  %p140_p7 = scmp.eq.s32.totalorder %s137_s26, 0 }
   0xb   : > { %p1226_p8 = por %p159_p5, %p158_p3  ;;  %p210_p9 = scmp.lt.s32.totalorder %s1150_s20, 5 }
   0xc   : > { %s1232_s28 = scalar_select %p140_p7, %s1138_s17, %s142_s24  }
   0xd   : > { %p211_p10 = pnand %p898_p6, %p210_p9 }
   0xe   : > { %p258_p11 = scmp.lt.s32.totalorder (!%p211_p10), %s1142_s18, 3  ;;  %s248_s12 = sand.u32 (!%p211_p10), 1, %s1134_s16  }
   0xf   : > { %214 = sbr.rel (%p211_p10) target bundleno = 517 (0x205), region = 36  ;;  %s899_s22 = sshll.u32 (!%p211_p10), %s248_s12, 6 }
  0x10   : > { %s250_s24 = scalar_lea.vmem (!%p211_p10), [#allocation2], %s899_s22  ;;  %s764_s8 = scalar_lea.sflag (!%p211_p10), [#allocation3], %s248_s12 }
  0x11   : > { %s778_s6 = sshll.u32 (!%p211_p10), %s250_s24, 4  ;;  %s1092_s13 = scalar_lea.hbm (!%p211_p10), %s1339_s4, 256  ;;  %s779_s6 = int_to_ptr.vmem [resolvable:$true] %s778_s6 }
  0x14   : > { %s259_s29 = scalar_select %p258_p11, %s1142_s18, 3  ;;  %v964_v1 = vld [vmem:[%s1335_s0] sm:$0xff]  ;;  %v967_v2 = vld [vmem:[%s1335_s0 + $0x18] sm:$0xff]  ;;  %vm338_vm0 = vcmask 130048   ;;  %v970_v3 = vld [vmem:[%s1335_s0 + $0x30] sm:$0xff]  ;;  %vm754_vm1 = vcmask 64512  }
  0x15   : > { %v965_v4 = vld [vmem:[%s1335_s0 + $0x8] sm:$0xff]  ;;  %v968_v5 = vld [vmem:[%s1335_s0 + $0x20] sm:$0xff]  ;;  %v971_v6 = vld [vmem:[%s1335_s0 + $0x38] sm:$0xff] }
  0x16   : > { %s1236_s30 = sshll.u32 %s259_s29, 3  ;;  %v966_v7 = vld [vmem:[%s1335_s0 + $0x10] sm:$0xff]  ;;  %v969_v8 = vld [vmem:[%s1335_s0 + $0x28] sm:$0xff] }
  0x17   : > { %s267_s7 = scalar_lea.vmem %s1337_s2, %s1236_s30  ;;  %s262_s11 = scalar_lea.vmem %s1336_s1, %s1236_s30 }
  0x18   : > { %v972_v0 = vld [vmem:[%s267_s7] sm:$0xff]  ;;  %s271_s21 = scalar_lea.vmem %s1338_s3, %s1236_s30  ;;  %s974_s30 = sshll.u32 %s1142_s18, 6 }
  0x19   : > { %370 = vmatpush.bf16.msra.mxu0 %v972_v0  ;;  %975 = vmatpush.bf16.msra.mxu2 %v972_v0  ;;  %v973_v33 = vld [vmem:[%s262_s11] sm:$0xff]  ;;  %s777_s5 = scalar_lea.hbm %s1339_s4, %s974_s30 }
  0x1a   : > { %976 = vmatpush.bf16.msra.mxu3 %v972_v0  ;;  %723 = vmatpush.bf16.msra.mxu1 %v973_v33  ;;  %s780_s7 = sshll.u32 %s777_s5, 4  ;;  %s781_s7 = int_to_ptr.hbm [resolvable:$true] %s780_s7 }
  0x1b   : > { %s1086_s18 = sshra.s32 %s781_s7, 4  ;;  %s1087_s18 = int_to_ptr.hbm [resolvable:$true] %s1086_s18 }
  0x1c   : > { %941 = vmatmul.msk.bf16.vlgmr.msra.gmra.mxu0 %vm338_vm0, %v964_v1  ;;  %944 = vmatmul.msk.bf16.vlgmr.msra.gmra.mxu2 %vm338_vm0, %v967_v2  ;;  %v745_v2 = vld [vmem:[%s271_s21] sm:$0xff]  ;;  %s1088_s9 = scalar_lea.hbm %s1087_s18, 64  ;;  %p1093_p1 = scmp.lt.s32.totalorder %s1087_s18, %s1339_s4 }
  0x1d   : > { %947 = vmatmul.msk.bf16.vlgmr.msra.gmra.mxu3 %vm338_vm0, %v970_v3  ;;  %p1089_p12 = scmp.ne.s32.totalorder %s1087_s18, %s1088_s9  ;;  %p1094_p2 = scmp.lt.s32.totalorder %s1092_s13, %s1088_s9 }
  0x1e   : > { %977 = vmatpush.bf16.msrb.mxu3 %v973_v33 }
  0x1f   : > { %p1090_p13 = pnand %p1089_p12, %p1219_p4  ;;  %p1095_p3 = por %p1094_p2, %p1093_p1 }
  0x21   : > { %p1091_p0 = pneg %p1090_p13 }
  0x23   : > { %p1096_p5 = pnand %p1095_p3, %p1091_p0 }
  0x2c   : > { %942 = vmatmul.msk.bf16.gmra.mxu0 %vm338_vm0, %v965_v4  ;;  %945 = vmatmul.msk.bf16.gmra.mxu2 %vm338_vm0, %v968_v5 }
  0x2d   : > { %948 = vmatmul.msk.bf16.gmra.mxu3 %vm338_vm0, %v971_v6 }
  0x3c   : > { %943 = vmatmul.msk.bf16.gmra.mxu0 %vm338_vm0, %v966_v7  ;;  %946 = vmatmul.msk.bf16.gmra.mxu2 %vm338_vm0, %v969_v8 }
  0x99   : > { %v372_v9 = vpop.f32.mrf.mxu0 }
  0x9f   : > { %v387_v10 = vpop.f32.mrf.mxu2 }
  0xa0   : > { %v402_v11 = vpop.f32.mrf.mxu3 }
  0xa1   : > { %v374_v12 = vpop.f32.mrf.mxu0 }
  0xa7   : > { %v389_v13 = vpop.f32.mrf.mxu2 }
  0xa8   : > { %v404_v14 = vpop.f32.mrf.mxu3 }
  0xa9   : > { %v377_v15 = vpop.f32.mrf.mxu0 }
  0xaa   : > { %v1036_v16 = vpack.i.bf16 %v377_v15, %v372_v9 }
  0xac   : > { %1037 = vxpose.xlu0.b32.start [1/2] (short) (narrow) %v1036_v16, 8 }
  0xaf   : > { %v392_v17 = vpop.f32.mrf.mxu2 }
  0xb0   : > { %v407_v18 = vpop.f32.mrf.mxu3 }
  0xb1   : > { %v379_v19 = vpop.f32.mrf.mxu0  ;;  %v1054_v20 = vpack.i.bf16 %v407_v18, %v402_v11 }
  0xb2   : > { %v1038_v21 = vpack.i.bf16 %v379_v19, %v374_v12 }
  0xb3   : > { %1055 = vxpose.xlu2.b32.start [1/2] (short) (narrow) %v1054_v20, 8 }
  0xb4   : > { %1039 = vxpose.xlu0.b32.end [2/2] (short) (narrow) %v1038_v21, 8 }
  0xb7   : > { %v394_v22 = vpop.f32.mrf.mxu2 }
  0xb8   : > { %v409_v23 = vpop.f32.mrf.mxu3 }
  0xb9   : > { %v382_v24 = vpop.f32.mrf.mxu0  ;;  %v1056_v25 = vpack.i.bf16 %v409_v23, %v404_v14 }
  0xba   : > { %v1045_v26 = vpack.i.bf16 %v387_v10, %v382_v24 }
  0xbb   : > { %1057 = vxpose.xlu2.b32.end [2/2] (short) (narrow) %v1056_v25, 8 }
  0xbc   : > { %1046 = vxpose.xlu1.b32.start [1/2] (short) (narrow) %v1045_v26, 8 }
  0xbf   : > { %v397_v27 = vpop.f32.mrf.mxu2 }
  0xc0   : > { %v1063_v28 = vpack.i.bf16 %v397_v27, %v392_v17 }
  0xc1   : > { %v384_v29 = vpop.f32.mrf.mxu0 }
  0xc2   : > { %v1047_v30 = vpack.i.bf16 %v389_v13, %v384_v29  ;;  %1064 = vxpose.xlu0.b32.start [1/2] (short) (narrow) %v1063_v28, 8 }
  0xc4   : > { %1048 = vxpose.xlu1.b32.end [2/2] (short) (narrow) %v1047_v30, 8 }
  0xc7   : > { %v399_v31 = vpop.f32.mrf.mxu2 }
  0xc8   : > { %v1065_v32 = vpack.i.bf16 %v399_v31, %v394_v22 }
  0xca   : > { %1066 = vxpose.xlu0.b32.end [2/2] (short) (narrow) %v1065_v32, 8 }
 0x14c   : > { %v1058_v34 = vpop.trf.xlu2 }
 0x14d   : > { %v1062_v35 = vunpack.i.h.bf16 %v1058_v34  ;;  %v1059_v36 = vunpack.i.l.bf16 %v1058_v34 }
 0x14f   : > { %v675_v37 = vpack.c.bf16 %v1062_v35, %v1062_v35  ;;  %v674_v38 = vpack.c.bf16 %v1059_v36, %v1059_v36 }
 0x150   : > { %v1040_v39 = vpop.trf.xlu0 }
 0x151   : > { %v1044_v40 = vunpack.i.h.bf16 %v1040_v39  ;;  %v1041_v41 = vunpack.i.l.bf16 %v1040_v39  ;;  %v693_v42 = vunpack.c.l.b16 %v675_v37  ;;  %v692_v43 = vunpack.c.l.b16 %v674_v38 }
 0x153   : > { %v669_v44 = vpack.c.bf16 %v1044_v40, %v1044_v40  ;;  %v668_v45 = vpack.c.bf16 %v1041_v41, %v1041_v41  ;;  %v697_v46 = vpack.c.b16 %v693_v42, %v692_v43 }
 0x155   : > { %v686_v47 = vunpack.c.l.b16 %v668_v45  ;;  %v687_v48 = vunpack.c.l.b16 %v669_v44  ;;  %956 = vmatmul.msk.bf16.vlgmr.msrb.gmra.mxu3 %vm338_vm0, %v697_v46 }
 0x157   : > { %v694_v49 = vpack.c.b16 %v687_v48, %v686_v47 }
 0x159   : > { %953 = vmatmul.msk.bf16.vlgmr.msra.gmra.mxu1 %vm338_vm0, %v694_v49 }
 0x160   : > { %v1049_v50 = vpop.trf.xlu1 }
 0x161   : > { %v1053_v51 = vunpack.i.h.bf16 %v1049_v50  ;;  %v1050_v52 = vunpack.i.l.bf16 %v1049_v50 }
 0x163   : > { %v671_v53 = vpack.c.bf16 %v1053_v51, %v1053_v51  ;;  %v670_v54 = vpack.c.bf16 %v1050_v52, %v1050_v52 }
 0x165   : > { %v689_v55 = vunpack.c.l.b16 %v671_v53  ;;  %v688_v56 = vunpack.c.l.b16 %v670_v54 }
 0x166   : > { %v1067_v57 = vpop.trf.xlu0 }
 0x167   : > { %v695_v58 = vpack.c.b16 %v689_v55, %v688_v56  ;;  %v1071_v59 = vunpack.i.h.bf16 %v1067_v57  ;;  %v1068_v60 = vunpack.i.l.bf16 %v1067_v57 }
 0x169   : > { %954 = vmatmul.msk.bf16.gmra.mxu1 %vm338_vm0, %v695_v58  ;;  %v673_v61 = vpack.c.bf16 %v1071_v59, %v1071_v59  ;;  %v672_v62 = vpack.c.bf16 %v1068_v60, %v1068_v60 }
 0x16b   : > { %v691_v63 = vunpack.c.l.b16 %v673_v61  ;;  %v690_v0 = vunpack.c.l.b16 %v672_v62 }
 0x16d   : > { %v696_v1 = vpack.c.b16 %v691_v63, %v690_v0 }
 0x179   : > { %955 = vmatmul.msk.bf16.gmra.mxu1 %vm338_vm0, %v696_v1 }
 0x1d6   : > { %v725_v3 = vpop.f32.mrf.mxu1 }
 0x1d7   : > { %v746_v4 = vmul.f32 %v745_v2, %v725_v3 }
 0x1d8   : > { %v740_v5 = vpop.f32.mrf.mxu3 }
 0x1d9   : > { %755 = vst.msk [vmem:[%s250_s24] sm:$0xff] %vm754_vm1, %v746_v4  ;;  %v752_v6 = vmul.f32 %v745_v2, %v740_v5 }
 0x1db   : > { %761 = vst.msk [vmem:[%s250_s24 + $0x30] sm:$0xff] %vm754_vm1, %v752_v6 }
 0x1de   : > { %v727_v7 = vpop.f32.mrf.mxu1 }
 0x1df   : > { %v747_v8 = vmul.f32 %v745_v2, %v727_v7 }
 0x1e0   : > { %v742_v9 = vpop.f32.mrf.mxu3 }
 0x1e1   : > { %756 = vst.msk [vmem:[%s250_s24 + $0x8] sm:$0xff] %vm754_vm1, %v747_v8  ;;  %v753_v10 = vmul.f32 %v745_v2, %v742_v9 }
 0x1e3   : > { %762 = vst.msk [vmem:[%s250_s24 + $0x38] sm:$0xff] %vm754_vm1, %v753_v10 }
 0x1e6   : > { %v730_v11 = vpop.f32.mrf.mxu1 }
 0x1e7   : > { %v748_v12 = vmul.f32 %v745_v2, %v730_v11 }
 0x1e9   : > { %757 = vst.msk [vmem:[%s250_s24 + $0x10] sm:$0xff] %vm754_vm1, %v748_v12 }
 0x1ee   : > { %v732_v13 = vpop.f32.mrf.mxu1 }
 0x1ef   : > { %v749_v14 = vmul.f32 %v745_v2, %v732_v13 }
 0x1f1   : > { %758 = vst.msk [vmem:[%s250_s24 + $0x18] sm:$0xff] %vm754_vm1, %v749_v14 }
 0x1f6   : > { %v735_v15 = vpop.f32.mrf.mxu1 }
 0x1f7   : > { %v750_v16 = vmul.f32 %v745_v2, %v735_v15 }
 0x1f9   : > { %759 = vst.msk [vmem:[%s250_s24 + $0x20] sm:$0xff] %vm754_vm1, %v750_v16 }
 0x1fe   : > { %v737_v17 = vpop.f32.mrf.mxu1 }
 0x1ff   : > { %v751_v18 = vmul.f32 %v745_v2, %v737_v17 }
 0x201   : > { %760 = vst.msk [vmem:[%s250_s24 + $0x28] sm:$0xff] %vm754_vm1, %v751_v18 }
 0x202   : > { %1099 = shalt.err (!%p1096_p5)
}
 0x203   : > { %s1152_s12 = smov 128   ;;  %s1153_s22 = smov 8  }
 0x204   : > { %978 = dma.vmem_to_hbm [thread:$0]  (%p1219_p4), %s779_s6, 1024, %s781_s7, %s764_s8, %s1152_s12, %s1152_s12, %s1153_s22  }
 0x205 PF: > { %p984_p6 = scmp.ge.s32.totalorder %s1150_s20, 2  ;;  %s795_s24 = sand.u32 1, %s1130_s15  }
 0x206   : > { %s796_s30 = scalar_lea.sflag [#allocation3], %s795_s24 }
 0x207   : > { %p981_p7 = pnand %p984_p6, %p1226_p8 }
 0x209   : > { %p982_p9 = pneg %p981_p7 }
 0x20b   : > { %1125 = dma.done.wait (%p982_p9), %s796_s30, 1024  }
 0x20c   : > { %1127 = vsyncadd (%p982_p9), %s796_s30, 4294966272  ;;  %s17_s20 = sadd.s32 1, %s1150_s20   ;;  %s1342_s15 = smov %s1134_s16 }
 0x20d   : > { %p14_p10 = scmp.ge.s32.totalorder %s17_s20, 6   ;;  %s1343_s16 = smov %s1138_s17 }
 0x20e   : > { %s1344_s17 = smov %s1232_s28  ;;  %s1345_s18 = smov %s1146_s19 }
 0x20f   : > { %s1346_s19 = smov %s1348_s23  ;;  %16 = sbr.rel (!%p14_p10) target bundleno = 4 (0x4), region = 80 }
 0x214   :  { %802 = vsyncpa [#allocation3], 1 }
 0x215   :  { %804 = vsyncpa [#allocation3 + $0x1], 1 }

</bundles_post_ra>
